<compile_context>
chip_gen: v6e
topology: v6e:2x2x1
jax: 0.10.0
libtpu: 0.0.40
codegen_flags: <defaults>
</compile_context>

<pallas_src>
import functools

import jax
import jax.numpy as jnp
from jax import lax
from jax.experimental import pallas as pl
from jax.experimental.pallas import tpu as pltpu


def _round_up(x: int, m: int) -> int:
    return ((x + m - 1) // m) * m


def _snap_tile(requested: int, n_pad: int) -> int:
    """Largest multiple of 128 that divides n_pad and is <= requested."""
    requested = max(128, min(requested, n_pad))
    k = n_pad // 128
    for d in range(k, 0, -1):
        if k % d == 0 and d * 128 <= requested:
            return d * 128
    return 128  # unreachable: d == 1 always satisfies


def _decoder_kernel(t_ref, z_ref, adj_ref, *, approx: bool):
    # logits[m, n] = sum_k t[m, k] * z_j[n, k]   (NT contraction, no transpose)
    logits = lax.dot_general(
        t_ref[...],
        z_ref[...],
        dimension_numbers=(((1,), (1,)), ((), ())),
        preferred_element_type=jnp.float32,
    )
    # sigmoid(x) = 1 / (1 + exp(-x)); exp + (approx) reciprocal both run on the
    # EUP slot, leaving VALU/store slots free -> epilogue stays writeback-bound.
    denom = 1.0 + jnp.exp(-logits)
    adj_ref[...] = pl.reciprocal(denom, approx=approx).astype(adj_ref.dtype)


def inner_product_decoder(
    z: jax.Array,
    weight: jax.Array,
    *,
    tm: int = 1024,
    tn: int = 1024,
    out_dtype=None,
    vmem_limit_bytes: int | None = 32 * 1024 * 1024,
    approx_sigmoid: bool = True,
) -> jax.Array:
    """adj = sigmoid((z @ weight) @ z.T) as a tiled Pallas TPU kernel.

    tm/tn are output tile sizes (multiples of 128; snapped down to divide the
    128-padded N).  Prefer growing tn over tm (keeps >= 2 row blocks for v7x
    megacore).  out_dtype defaults to z.dtype for parity with the PyTorch
    module; jnp.bfloat16 is the recommended production setting (halves the
    dominant O(N^2) HBM writeback; logits still accumulate in f32).
    """
    n, size = z.shape
    assert weight.shape == (size, size)
    if out_dtype is None:
        out_dtype = z.dtype

    # t = z @ W outside the kernel (O(N*size^2), negligible vs the main sweep).
    # Single cast back to the MXU operand dtype happens once, here.
    t = jnp.dot(z, weight, preferred_element_type=jnp.float32).astype(z.dtype)

    # Tight padding: only to the next multiple of 128; tiles snap to divisors.
    n_pad = _round_up(n, 128)
    tm = _snap_tile(tm, n_pad)
    tn = _snap_tile(tn, n_pad)
    # Megacore: keep at least 2 row blocks when the problem allows it.
    if n_pad // tm < 2 and n_pad >= 256:
        tm = _snap_tile(n_pad // 2, n_pad)

    if n_pad != n:
        pad = ((0, n_pad - n), (0, 0))
        t_p = jnp.pad(t, pad)
        z_p = jnp.pad(z, pad)
    else:
        t_p, z_p = t, z

    grid = (n_pad // tm, n_pad // tn)

    in_itemsize = jnp.dtype(z.dtype).itemsize
    out_itemsize = jnp.dtype(out_dtype).itemsize
    cost = pl.CostEstimate(
        flops=2 * n_pad * n_pad * size,
        transcendentals=n_pad * n_pad,
        bytes_accessed=(
            (n_pad * size + (n_pad // tm) * n_pad * size) * in_itemsize
            + n_pad * n_pad * out_itemsize
        ),
    )

    kernel = functools.partial(_decoder_kernel, approx=approx_sigmoid)

    adj = pl.pallas_call(
        kernel,
        out_shape=jax.ShapeDtypeStruct((n_pad, n_pad), out_dtype),
        grid_spec=pltpu.PrefetchScalarGridSpec(
            num_scalar_prefetch=0,
            grid=grid,
            in_specs=[
                pl.BlockSpec((tm, size), lambda i, j: (i, 0)),  # t row block
                pl.BlockSpec((tn, size), lambda i, j: (j, 0)),  # z col block
            ],
            out_specs=pl.BlockSpec((tm, tn), lambda i, j: (i, j)),
        ),
        compiler_params=pltpu.CompilerParams(
            dimension_semantics=("parallel", "arbitrary"),
            vmem_limit_bytes=vmem_limit_bytes,
        ),
        cost_estimate=cost,
    )(t_p, z_p)

    if n_pad != n:
        adj = adj[:n, :n]
    return adj


def xavier_uniform(key, size: int) -> jax.Array:
    # torch.nn.init.xavier_uniform_ on a (size, size) matrix:
    # U(-a, a) with a = sqrt(6 / (fan_in + fan_out)) = sqrt(6 / (2*size))
    limit = (6.0 / (size + size)) ** 0.5
    return jax.random.uniform(
        key, (size, size), dtype=jnp.float32, minval=-limit, maxval=limit
    )


if __name__ == "__main__":
    key = jax.random.PRNGKey(0)
    k_z, k_w = jax.random.split(key)

    # Case 1: N not a multiple of 128 -> exercises padding/slicing + tile snap.
    N, SIZE = 200, 32
    z = jax.random.normal(k_z, (N, SIZE), dtype=jnp.float32)
    weight = xavier_uniform(k_w, SIZE)

    adj = jax.block_until_ready(inner_product_decoder(z, weight))
    ref = jax.nn.sigmoid((z @ weight) @ z.T)
    assert adj.shape == (N, N)
    assert jnp.allclose(adj, ref, atol=5e-3, rtol=0.0), float(
        jnp.max(jnp.abs(adj - ref))
    )

    # Case 2: multiple row AND column blocks (grid (2, 2)).
    N2, SIZE2 = 256, 64
    z2 = jax.random.normal(jax.random.PRNGKey(1), (N2, SIZE2), dtype=jnp.float32)
    w2 = xavier_uniform(jax.random.PRNGKey(2), SIZE2)
    adj2 = jax.block_until_ready(inner_product_decoder(z2, w2, tm=128, tn=128))
    ref2 = jax.nn.sigmoid((z2 @ w2) @ z2.T)
    assert adj2.shape == (N2, N2)
    assert jnp.allclose(adj2, ref2, atol=5e-3, rtol=0.0), float(
        jnp.max(jnp.abs(adj2 - ref2))
    )

    # Case 3: recommended production config (bf16 output store, f32 accumulate).
    adj3 = jax.block_until_ready(
        inner_product_decoder(z, weight, out_dtype=jnp.bfloat16)
    )
    assert adj3.dtype == jnp.bfloat16 and adj3.shape == (N, N)
    assert jnp.allclose(adj3.astype(jnp.float32), ref, atol=2e-2, rtol=0.0), float(
        jnp.max(jnp.abs(adj3.astype(jnp.float32) - ref))
    )

    print("KERNEL_OK")
</pallas_src>

<mosaic_0001>
module attributes {stable_mosaic.version = 11 : i64} {
  func.func @_decoder_kernel(%arg0: i32, %arg1: i32, %arg2: memref<128x32xf32, #tpu.memory_space<vmem>>, %arg3: memref<256x32xf32, #tpu.memory_space<vmem>>, %arg4: memref<128x256xf32, #tpu.memory_space<vmem>>) attributes {dimension_semantics = [#tpu.dimension_semantics<parallel>, #tpu.dimension_semantics<arbitrary>], iteration_bounds = array<i64: 2, 1>, scalar_prefetch = 0 : i64, scratch_operands = 0 : i64, tpu.core_type = #tpu.core_type<tc>, window_params = [{transform_indices = @transform_0, window_bounds = array<i64: 128, 32>}, {transform_indices = @transform_1, window_bounds = array<i64: 256, 32>}, {transform_indices = @transform_2, window_bounds = array<i64: 128, 256>}]} {
    %c0 = arith.constant 0 : index
    %c0_0 = arith.constant 0 : index
    %0 = vector.load %arg2[%c0, %c0_0] : memref<128x32xf32, #tpu.memory_space<vmem>>, vector<128x32xf32>
    %c0_1 = arith.constant 0 : index
    %c0_2 = arith.constant 0 : index
    %1 = vector.load %arg3[%c0_1, %c0_2] : memref<256x32xf32, #tpu.memory_space<vmem>>, vector<256x32xf32>
    %cst = arith.constant dense<0.000000e+00> : vector<128x256xf32>
    %2 = tpu.matmul %0, %1, %cst {dimension_numbers = #tpu.dot_dimension_numbers<[1], [1], [0], [0], [0, 0, 1, 0], [], []>} : vector<128x32xf32>, vector<256x32xf32>, vector<128x256xf32> -> vector<128x256xf32>
    %cst_3 = arith.constant 0.000000e+00 : f32
    %3 = vector.broadcast %cst_3 : f32 to vector<128x256xf32>
    %4 = arith.subf %3, %2 : vector<128x256xf32>
    %5 = math.exp %4 : vector<128x256xf32>
    %cst_4 = arith.constant 1.000000e+00 : f32
    %6 = vector.broadcast %cst_4 : f32 to vector<128x256xf32>
    %7 = arith.addf %6, %5 : vector<128x256xf32>
    %8 = tpu.reciprocal %7 {approx = true} : vector<128x256xf32> -> vector<128x256xf32>
    %c0_5 = arith.constant 0 : index
    %c0_6 = arith.constant 0 : index
    %9 = vector.load %arg4[%c0_5, %c0_6] : memref<128x256xf32, #tpu.memory_space<vmem>>, vector<128x256xf32>
    tpu.vector_store %arg4[%c0_5, %c0_6], %8 {strides = array<i32>} : memref<128x256xf32, #tpu.memory_space<vmem>>, vector<128x256xf32>,
    return
  }
  func.func @transform_0(%arg0: i32, %arg1: i32) -> (i32, i32) {
    %c0_i32 = arith.constant 0 : i32
    %c0_i32_0 = arith.constant 0 : i32
    return %arg0, %c0_i32 : i32, i32
  }
  func.func @transform_1(%arg0: i32, %arg1: i32) -> (i32, i32) {
    %c0_i32 = arith.constant 0 : i32
    %c0_i32_0 = arith.constant 0 : i32
    return %arg1, %c0_i32 : i32, i32
  }
  func.func @transform_2(%arg0: i32, %arg1: i32) -> (i32, i32) {
    %c0_i32 = arith.constant 0 : i32
    return %arg0, %arg1 : i32, i32
  }
}

</mosaic_0001>

<bundles_post_ra>
// kernel: tpu_custom_call.1
= control target key start
LH: loop header
LB: loop body
LE: loop exit
PB: predicated region body
PF: predicated region fallthrough
CT: control target
= control target key end

     0   :  { %7 = vsyncpa [#allocation3], 0  ;;  %s1675_s0 = inlined_call_operand.vmem [shape: f32[256,32], index: 0, kind: input, shape index: {}]   ;;  %s1676_s1 = inlined_call_operand.vmem [shape: f32[256,32], index: 1, kind: input, shape index: {}]   ;;  %s1677_s2 = inlined_call_operand.hbm [shape: f32[256,256], index: 2, kind: output, shape index: {}]  }
   0x1   :  { %9 = vsyncpa [#allocation3 + $0x1], 0  ;;  %s1275_s9 = smov 0   ;;  %s1277_s10 = smov 0  }
   0x2   :  { %s1279_s11 = smov 0   ;;  %s1281_s12 = smov 0  }
   0x3   :  { %s1283_s13 = smov 0   ;;  %s1285_s14 = smov 0  }
   0x4 LB: > { %s833_s15 = sadd.s32 4294967295, %s1255_s14   ;;  %s834_s16 = sadd.s32 4294967294, %s1255_s14   ;;  %s1255_s14 = sphi %s1285_s14, %s15_s14   ;;  %s1251_s13 = sphi %s1283_s13, %s1684_s13   ;;  %s1247_s12 = sphi %s1281_s12, %s1683_s12   ;;  %s1243_s11 = sphi %s1279_s11, %s1682_s11   ;;  %s1239_s10 = sphi %s1277_s10, %s1681_s10   ;;  %s1235_s9 = sphi %s1275_s9, %s1680_s9  }
   0x5   : > { %s27_s17 = sadd.s32 1, %s1251_s13  ;;  %s88_s18 = sadd.s32 1, %s1243_s11 }
   0x6   : > { %p29_p0 = scmp.ge.s32.totalorder %s27_s17, 2  ;;  %p98_p1 = scmp.ne.s32.totalorder %s1243_s11, %s1239_s10 }
   0x7   : > { %p99_p2 = scmp.eq.s32.totalorder %s833_s15, 1  ;;  %p104_p3 = scmp.ne.s32.totalorder %s1239_s10, %s1235_s9 }
   0x8   : > { %s1686_s17 = smov (%p29_p0, %s27_s17), 0  ;;  %p105_p5 = scmp.eq.s32.totalorder %s834_s16, 1 }
   0x9   : > { %p1315_p4 = por %p99_p2, %p98_p1  ;;  %s83_s20 = ssub.s32 %s1251_s13, %s1686_s17 }
   0xa   : > { %p838_p6 = scmp.ge.s32.totalorder %s1255_s14, 1  ;;  %p86_p7 = scmp.eq.s32.totalorder %s83_s20, 0 }
   0xb   : > { %p1322_p8 = por %p105_p5, %p104_p3  ;;  %p141_p9 = scmp.lt.s32.totalorder %s1255_s14, 3 }
   0xc   : > { %s1328_s22 = scalar_select %p86_p7, %s1243_s11, %s88_s18  }
   0xd   : > { %p142_p10 = pnand %p838_p6, %p141_p9 }
   0xe   : > { %s840_s29 = sshll.u32 (!%p142_p10), %s1247_s12, 4  ;;  %s897_s25 = sshll.u32 (!%p142_p10), %s1247_s12, 12 }
   0xf   : > { %145 = sbr.rel (%p142_p10) target bundleno = 373 (0x175), region = 28  ;;  %p169_p11 = scmp.lt.s32.totalorder (!%p142_p10), %s840_s29, 31 }
  0x10   : > { %s1257_s3 = smov (!%p142_p10), [#allocation2]  }
  0x11   : > { %s1183_s4 = sshll.u32 (!%p142_p10), %s1257_s3, 4  ;;  %s1184_s4 = int_to_ptr.vmem [resolvable:$false] %s1183_s4 }
  0x12   : > { %s1185_s5 = scalar_lea.vmem (!%p142_p10), %s1184_s4, 8192 }
  0x14   : > { %v229_v0 = vld [vmem:[%s1676_s1 + $0xf8] sm:$0xff]  ;;  %vm230_vm0 = vcmask 261120   ;;  %v228_v2 = vld [vmem:[%s1676_s1 + $0xf0] sm:$0xff]  ;;  %s1688_s29 = smov (!%p169_p11, %s840_s29), 31  ;;  %v227_v4 = vld [vmem:[%s1676_s1 + $0xe8] sm:$0xff] }
  0x15   : > { %v213_v1 = vld [vmem:[%s1676_s1 + $0x78] sm:$0xff]  ;;  %898 = vmatprep.subr.msk.mxu0 %vm230_vm0, %v229_v0  ;;  %962 = vmatprep.subr.msk.mxu1 %vm230_vm0, %v229_v0  ;;  %v212_v3 = vld [vmem:[%s1676_s1 + $0x70] sm:$0xff]  ;;  %s841_s6 = sshll.u32 %s1688_s29, 3  ;;  %v211_v5 = vld [vmem:[%s1676_s1 + $0x68] sm:$0xff]  ;;  %s1621_s29 = scalar_lea.hbm %s1677_s2, %s897_s25 }
  0x16   : > { %899 = vmatpush3.xpose.msk.msra.mxu0 %vm230_vm0, %v213_v1  ;;  %978 = vmatpush3.xpose.msk.msra.mxu1 %vm230_vm0, %v213_v1  ;;  %s1362_s18 = scalar_lea.vmem %s1675_s0, %s841_s6  ;;  %v226_v6 = vld [vmem:[%s1676_s1 + $0xe0] sm:$0xff]  ;;  %v225_v10 = vld [vmem:[%s1676_s1 + $0xd8] sm:$0xff]  ;;  %v224_v12 = vld [vmem:[%s1676_s1 + $0xd0] sm:$0xff] }
  0x17   : > { %900 = vmatprep.subr.msk.mxu0 %vm230_vm0, %v228_v2  ;;  %963 = vmatprep.subr.msk.mxu1 %vm230_vm0, %v228_v2  ;;  %v1370_v7 = vld [vmem:[%s1362_s18] sm:$0xff]  ;;  %v209_v11 = vld [vmem:[%s1676_s1 + $0x58] sm:$0xff]  ;;  %v208_v13 = vld [vmem:[%s1676_s1 + $0x50] sm:$0xff] }
  0x18   : > { %v210_v8 = vld [vmem:[%s1676_s1 + $0x60] sm:$0xff]  ;;  %930 = vmatprep.mubr.msk.f32.mxu0 %vm230_vm0, %v1370_v7  ;;  %v223_v14 = vld [vmem:[%s1676_s1 + $0xc8] sm:$0xff]  ;;  %v221_v18 = vld [vmem:[%s1676_s1 + $0xb8] sm:$0xff] }
  0x19   : > { %v1378_v9 = vld [vmem:[%s1362_s18 + $0x40] sm:$0xff]  ;;  %v207_v15 = vld [vmem:[%s1676_s1 + $0x48] sm:$0xff]  ;;  %v205_v19 = vld [vmem:[%s1676_s1 + $0x38] sm:$0xff] }
  0x1a   : > { %901 = vmatpush3.xpose.msk.msra.mxu0 %vm230_vm0, %v212_v3  ;;  %979 = vmatpush3.xpose.msk.msra.mxu1 %vm230_vm0, %v212_v3  ;;  %v222_v16 = vld [vmem:[%s1676_s1 + $0xc0] sm:$0xff]  ;;  %v220_v20 = vld [vmem:[%s1676_s1 + $0xb0] sm:$0xff]  ;;  %v219_v22 = vld [vmem:[%s1676_s1 + $0xa8] sm:$0xff] }
  0x1b   : > { %902 = vmatprep.subr.msk.mxu0 %vm230_vm0, %v227_v4  ;;  %964 = vmatprep.subr.msk.mxu1 %vm230_vm0, %v227_v4  ;;  %v206_v17 = vld [vmem:[%s1676_s1 + $0x40] sm:$0xff]  ;;  %v204_v21 = vld [vmem:[%s1676_s1 + $0x30] sm:$0xff]  ;;  %v203_v23 = vld [vmem:[%s1676_s1 + $0x28] sm:$0xff] }
  0x1c   : > { %946 = vmatprep.mubr.msk.f32.mxu1 %vm230_vm0, %v1378_v9  ;;  %v218_v24 = vld [vmem:[%s1676_s1 + $0xa0] sm:$0xff]  ;;  %v217_v26 = vld [vmem:[%s1676_s1 + $0x98] sm:$0xff]  ;;  %v216_v28 = vld [vmem:[%s1676_s1 + $0x90] sm:$0xff] }
  0x1d   : > { %v202_v25 = vld [vmem:[%s1676_s1 + $0x20] sm:$0xff]  ;;  %v201_v27 = vld [vmem:[%s1676_s1 + $0x18] sm:$0xff]  ;;  %v200_v29 = vld [vmem:[%s1676_s1 + $0x10] sm:$0xff] }
  0x1e   : > { %903 = vmatpush3.xpose.msk.msra.mxu0 %vm230_vm0, %v211_v5  ;;  %980 = vmatpush3.xpose.msk.msra.mxu1 %vm230_vm0, %v211_v5  ;;  %v215_v30 = vld [vmem:[%s1676_s1 + $0x88] sm:$0xff]  ;;  %v214_v32 = vld [vmem:[%s1676_s1 + $0x80] sm:$0xff]  ;;  %v184_v36 = vld [vmem:[%s1362_s18 + $0x10] sm:$0xff] }
  0x1f   : > { %904 = vmatprep.subr.msk.mxu0 %vm230_vm0, %v226_v6  ;;  %965 = vmatprep.subr.msk.mxu1 %vm230_vm0, %v226_v6  ;;  %v199_v31 = vld [vmem:[%s1676_s1 + $0x8] sm:$0xff]  ;;  %v198_v33 = vld [vmem:[%s1676_s1] sm:$0xff]  ;;  %v192_v37 = vld [vmem:[%s1362_s18 + $0x50] sm:$0xff] }
  0x20   : > { %v183_v34 = vld [vmem:[%s1362_s18 + $0x8] sm:$0xff]  ;;  %v185_v38 = vld [vmem:[%s1362_s18 + $0x18] sm:$0xff]  ;;  %v186_v40 = vld [vmem:[%s1362_s18 + $0x20] sm:$0xff] }
  0x21   : > { %v191_v35 = vld [vmem:[%s1362_s18 + $0x48] sm:$0xff]  ;;  %v193_v39 = vld [vmem:[%s1362_s18 + $0x58] sm:$0xff]  ;;  %v194_v41 = vld [vmem:[%s1362_s18 + $0x60] sm:$0xff] }
  0x22   : > { %905 = vmatpush3.xpose.msk.msra.mxu0 %vm230_vm0, %v210_v8  ;;  %981 = vmatpush3.xpose.msk.msra.mxu1 %vm230_vm0, %v210_v8  ;;  %v187_v42 = vld [vmem:[%s1362_s18 + $0x28] sm:$0xff]  ;;  %v188_v44 = vld [vmem:[%s1362_s18 + $0x30] sm:$0xff]  ;;  %v189_v46 = vld [vmem:[%s1362_s18 + $0x38] sm:$0xff] }
  0x23   : > { %906 = vmatprep.subr.msk.mxu0 %vm230_vm0, %v225_v10  ;;  %966 = vmatprep.subr.msk.mxu1 %vm230_vm0, %v225_v10  ;;  %v195_v43 = vld [vmem:[%s1362_s18 + $0x68] sm:$0xff]  ;;  %v196_v45 = vld [vmem:[%s1362_s18 + $0x70] sm:$0xff]  ;;  %v197_v47 = vld [vmem:[%s1362_s18 + $0x78] sm:$0xff]  ;;  %s165_s18 = sand.u32 1, %s1239_s10  }
  0x24   : > { %s839_s23 = sshll.u32 %s165_s18, 8  ;;  %s1630_s12 = scalar_lea.sflag [#allocation3], %s165_s18 }
  0x25   : > { %s1581_s24 = scalar_lea.vmem [#allocation2], %s839_s23 }
  0x26   : > { %907 = vmatpush3.xpose.msk.msra.mxu0 %vm230_vm0, %v209_v11  ;;  %982 = vmatpush3.xpose.msk.msra.mxu1 %vm230_vm0, %v209_v11  ;;  %s745_s26 = sshll.u32 %s1581_s24, 4  ;;  %s1623_s26 = int_to_ptr.vmem [resolvable:$true] %s745_s26 }
  0x27   : > { %908 = vmatprep.subr.msk.mxu0 %vm230_vm0, %v224_v12  ;;  %967 = vmatprep.subr.msk.mxu1 %vm230_vm0, %v224_v12  ;;  %s1179_s30 = scalar_lea.vmem %s1623_s26, 4096  ;;  %p1186_p1 = scmp.lt.s32.totalorder %s1623_s26, %s1184_s4 }
  0x28   : > { %p1180_p12 = scmp.ne.s32.totalorder %s1623_s26, %s1179_s30  ;;  %p1187_p2 = scmp.lt.s32.totalorder %s1185_s5, %s1179_s30 }
  0x2a   : > { %909 = vmatpush3.xpose.msk.msra.mxu0 %vm230_vm0, %v208_v13  ;;  %983 = vmatpush3.xpose.msk.msra.mxu1 %vm230_vm0, %v208_v13  ;;  %p1181_p13 = pnand %p1180_p12, %p1315_p4  ;;  %p1188_p3 = por %p1187_p2, %p1186_p1 }
  0x2b   : > { %910 = vmatprep.subr.msk.mxu0 %vm230_vm0, %v223_v14  ;;  %968 = vmatprep.subr.msk.mxu1 %vm230_vm0, %v223_v14 }
  0x2c   : > { %p1182_p0 = pneg %p1181_p13 }
  0x2e   : > { %911 = vmatpush3.xpose.msk.msra.mxu0 %vm230_vm0, %v207_v15  ;;  %984 = vmatpush3.xpose.msk.msra.mxu1 %vm230_vm0, %v207_v15  ;;  %p1189_p5 = pnand %p1188_p3, %p1182_p0 }
  0x2f   : > { %912 = vmatprep.subr.msk.mxu0 %vm230_vm0, %v222_v16  ;;  %969 = vmatprep.subr.msk.mxu1 %vm230_vm0, %v222_v16 }
  0x32   : > { %913 = vmatpush3.xpose.msk.msra.mxu0 %vm230_vm0, %v206_v17  ;;  %985 = vmatpush3.xpose.msk.msra.mxu1 %vm230_vm0, %v206_v17 }
  0x33   : > { %914 = vmatprep.subr.msk.mxu0 %vm230_vm0, %v221_v18  ;;  %970 = vmatprep.subr.msk.mxu1 %vm230_vm0, %v221_v18 }
  0x36   : > { %915 = vmatpush3.xpose.msk.msra.mxu0 %vm230_vm0, %v205_v19  ;;  %986 = vmatpush3.xpose.msk.msra.mxu1 %vm230_vm0, %v205_v19 }
  0x37   : > { %916 = vmatprep.subr.msk.mxu0 %vm230_vm0, %v220_v20  ;;  %971 = vmatprep.subr.msk.mxu1 %vm230_vm0, %v220_v20 }
  0x3a   : > { %917 = vmatpush3.xpose.msk.msra.mxu0 %vm230_vm0, %v204_v21  ;;  %987 = vmatpush3.xpose.msk.msra.mxu1 %vm230_vm0, %v204_v21 }
  0x3b   : > { %918 = vmatprep.subr.msk.mxu0 %vm230_vm0, %v219_v22  ;;  %972 = vmatprep.subr.msk.mxu1 %vm230_vm0, %v219_v22 }
  0x3e   : > { %919 = vmatpush3.xpose.msk.msra.mxu0 %vm230_vm0, %v203_v23  ;;  %988 = vmatpush3.xpose.msk.msra.mxu1 %vm230_vm0, %v203_v23 }
  0x3f   : > { %920 = vmatprep.subr.msk.mxu0 %vm230_vm0, %v218_v24  ;;  %973 = vmatprep.subr.msk.mxu1 %vm230_vm0, %v218_v24 }
  0x42   : > { %921 = vmatpush3.xpose.msk.msra.mxu0 %vm230_vm0, %v202_v25  ;;  %989 = vmatpush3.xpose.msk.msra.mxu1 %vm230_vm0, %v202_v25 }
  0x43   : > { %922 = vmatprep.subr.msk.mxu0 %vm230_vm0, %v217_v26  ;;  %974 = vmatprep.subr.msk.mxu1 %vm230_vm0, %v217_v26 }
  0x46   : > { %923 = vmatpush3.xpose.msk.msra.mxu0 %vm230_vm0, %v201_v27  ;;  %990 = vmatpush3.xpose.msk.msra.mxu1 %vm230_vm0, %v201_v27 }
  0x47   : > { %924 = vmatprep.subr.msk.mxu0 %vm230_vm0, %v216_v28  ;;  %975 = vmatprep.subr.msk.mxu1 %vm230_vm0, %v216_v28 }
  0x4a   : > { %925 = vmatpush3.xpose.msk.msra.mxu0 %vm230_vm0, %v200_v29  ;;  %991 = vmatpush3.xpose.msk.msra.mxu1 %vm230_vm0, %v200_v29 }
  0x4b   : > { %926 = vmatprep.subr.msk.mxu0 %vm230_vm0, %v215_v30  ;;  %976 = vmatprep.subr.msk.mxu1 %vm230_vm0, %v215_v30 }
  0x4e   : > { %927 = vmatpush3.xpose.msk.msra.mxu0 %vm230_vm0, %v199_v31  ;;  %992 = vmatpush3.xpose.msk.msra.mxu1 %vm230_vm0, %v199_v31 }
  0x4f   : > { %928 = vmatprep.subr.msk.mxu0 %vm230_vm0, %v214_v32  ;;  %977 = vmatprep.subr.msk.mxu1 %vm230_vm0, %v214_v32 }
  0x52   : > { %929 = vmatpush3.xpose.msk.msra.mxu0 %vm230_vm0, %v198_v33  ;;  %993 = vmatpush3.xpose.msk.msra.mxu1 %vm230_vm0, %v198_v33 }
  0x55   : > { %931 = vmatmul.mubr.msk.f32.vlgmr.msra.gmra.mxu0 %vm230_vm0, %v1370_v7  ;;  %947 = vmatmul.mubr.msk.f32.vlgmr.msra.gmra.mxu1 %vm230_vm0, %v1378_v9 }
  0x56   : > { %932 = vmatprep.mubr.msk.f32.mxu0 %vm230_vm0, %v183_v34  ;;  %948 = vmatprep.mubr.msk.f32.mxu1 %vm230_vm0, %v191_v35 }
  0x59   : > { %933 = vmatmul.mubr.msk.f32.gmra.mxu0 %vm230_vm0, %v183_v34  ;;  %949 = vmatmul.mubr.msk.f32.gmra.mxu1 %vm230_vm0, %v191_v35 }
  0x5a   : > { %934 = vmatprep.mubr.msk.f32.mxu0 %vm230_vm0, %v184_v36  ;;  %950 = vmatprep.mubr.msk.f32.mxu1 %vm230_vm0, %v192_v37 }
  0x5d   : > { %935 = vmatmul.mubr.msk.f32.gmra.mxu0 %vm230_vm0, %v184_v36  ;;  %951 = vmatmul.mubr.msk.f32.gmra.mxu1 %vm230_vm0, %v192_v37 }
  0x5e   : > { %936 = vmatprep.mubr.msk.f32.mxu0 %vm230_vm0, %v185_v38  ;;  %952 = vmatprep.mubr.msk.f32.mxu1 %vm230_vm0, %v193_v39 }
  0x61   : > { %937 = vmatmul.mubr.msk.f32.gmra.mxu0 %vm230_vm0, %v185_v38  ;;  %953 = vmatmul.mubr.msk.f32.gmra.mxu1 %vm230_vm0, %v193_v39 }
  0x62   : > { %938 = vmatprep.mubr.msk.f32.mxu0 %vm230_vm0, %v186_v40  ;;  %954 = vmatprep.mubr.msk.f32.mxu1 %vm230_vm0, %v194_v41 }
  0x65   : > { %939 = vmatmul.mubr.msk.f32.gmra.mxu0 %vm230_vm0, %v186_v40  ;;  %955 = vmatmul.mubr.msk.f32.gmra.mxu1 %vm230_vm0, %v194_v41 }
  0x66   : > { %940 = vmatprep.mubr.msk.f32.mxu0 %vm230_vm0, %v187_v42  ;;  %956 = vmatprep.mubr.msk.f32.mxu1 %vm230_vm0, %v195_v43 }
  0x69   : > { %941 = vmatmul.mubr.msk.f32.gmra.mxu0 %vm230_vm0, %v187_v42  ;;  %957 = vmatmul.mubr.msk.f32.gmra.mxu1 %vm230_vm0, %v195_v43 }
  0x6a   : > { %942 = vmatprep.mubr.msk.f32.mxu0 %vm230_vm0, %v188_v44  ;;  %958 = vmatprep.mubr.msk.f32.mxu1 %vm230_vm0, %v196_v45 }
  0x6d   : > { %943 = vmatmul.mubr.msk.f32.gmra.mxu0 %vm230_vm0, %v188_v44  ;;  %959 = vmatmul.mubr.msk.f32.gmra.mxu1 %vm230_vm0, %v196_v45 }
  0x6e   : > { %944 = vmatprep.mubr.msk.f32.mxu0 %vm230_vm0, %v189_v46  ;;  %960 = vmatprep.mubr.msk.f32.mxu1 %vm230_vm0, %v197_v47 }
  0x71   : > { %945 = vmatmul.mubr.msk.f32.gmra.mxu0 %vm230_vm0, %v189_v46  ;;  %961 = vmatmul.mubr.msk.f32.gmra.mxu1 %vm230_vm0, %v197_v47 }
 0x115   : > { %v441_v48 = vpop.f32.mrf.mxu0  ;;  %v489_v49 = vpop.f32.mrf.mxu1 }
 0x116   : > { %v536_v50 = vsub.f32 0.0, %v441_v48  ;;  %v552_v51 = vsub.f32 0.0, %v489_v49 }
 0x117   : > { %v443_v52 = vpop.f32.mrf.mxu0  ;;  %v491_v53 = vpop.f32.mrf.mxu1 }
 0x118   : > { %v568_v54 = vmul.f32 1.442695, %v536_v50  ;;  %v600_v55 = vmul.f32 1.442695, %v552_v51  ;;  %v537_v56 = vsub.f32 0.0, %v443_v52  ;;  %v553_v57 = vsub.f32 0.0, %v491_v53 }
 0x119   : > { %v447_v58 = vpop.f32.mrf.mxu0  ;;  %v495_v59 = vpop.f32.mrf.mxu1 }
 0x11a   : > { %1051 = vpow2.f32 %v568_v54  ;;  %v570_v60 = vmul.f32 1.442695, %v537_v56  ;;  %v602_v61 = vmul.f32 1.442695, %v553_v57  ;;  %v538_v62 = vsub.f32 0.0, %v447_v58 }
 0x11b   : > { %1053 = vpow2.f32 %v600_v55  ;;  %v554_v63 = vsub.f32 0.0, %v495_v59  ;;  %v449_v0 = vpop.f32.mrf.mxu0  ;;  %v497_v1 = vpop.f32.mrf.mxu1 }
 0x11c   : > { %1055 = vpow2.f32 %v570_v60  ;;  %v572_v2 = vmul.f32 1.442695, %v538_v62  ;;  %v539_v3 = vsub.f32 0.0, %v449_v0  ;;  %v555_v4 = vsub.f32 0.0, %v497_v1 }
 0x11d   : > { %1057 = vpow2.f32 %v602_v61  ;;  %v604_v5 = vmul.f32 1.442695, %v554_v63  ;;  %v453_v6 = vpop.f32.mrf.mxu0  ;;  %v501_v7 = vpop.f32.mrf.mxu1 }
 0x11e   : > { %1059 = vpow2.f32 %v572_v2  ;;  %v574_v8 = vmul.f32 1.442695, %v539_v3  ;;  %v606_v9 = vmul.f32 1.442695, %v555_v4  ;;  %v540_v10 = vsub.f32 0.0, %v453_v6 }
 0x11f   : > { %1061 = vpow2.f32 %v604_v5  ;;  %v556_v11 = vsub.f32 0.0, %v501_v7  ;;  %v455_v12 = vpop.f32.mrf.mxu0  ;;  %v503_v13 = vpop.f32.mrf.mxu1 }
 0x120   : > { %1063 = vpow2.f32 %v574_v8  ;;  %v576_v14 = vmul.f32 1.442695, %v540_v10  ;;  %v541_v15 = vsub.f32 0.0, %v455_v12  ;;  %v557_v16 = vsub.f32 0.0, %v503_v13 }
 0x121   : > { %1065 = vpow2.f32 %v606_v9  ;;  %v608_v17 = vmul.f32 1.442695, %v556_v11  ;;  %v459_v18 = vpop.f32.mrf.mxu0  ;;  %v507_v19 = vpop.f32.mrf.mxu1 }
 0x122   : > { %1067 = vpow2.f32 %v576_v14  ;;  %v578_v20 = vmul.f32 1.442695, %v541_v15  ;;  %v610_v21 = vmul.f32 1.442695, %v557_v16  ;;  %v542_v22 = vsub.f32 0.0, %v459_v18 }
 0x123   : > { %1069 = vpow2.f32 %v608_v17  ;;  %v558_v23 = vsub.f32 0.0, %v507_v19  ;;  %v461_v24 = vpop.f32.mrf.mxu0  ;;  %v509_v25 = vpop.f32.mrf.mxu1 }
 0x124   : > { %1071 = vpow2.f32 %v578_v20  ;;  %v580_v26 = vmul.f32 1.442695, %v542_v22  ;;  %v543_v27 = vsub.f32 0.0, %v461_v24  ;;  %v559_v28 = vsub.f32 0.0, %v509_v25 }
 0x125   : > { %1073 = vpow2.f32 %v610_v21  ;;  %v612_v29 = vmul.f32 1.442695, %v558_v23  ;;  %v1552_v30 = vpop.f32.mrf.mxu0  ;;  %v1554_v31 = vpop.f32.mrf.mxu1 }
 0x126   : > { %1075 = vpow2.f32 %v580_v26  ;;  %v582_v32 = vmul.f32 1.442695, %v543_v27  ;;  %v614_v33 = vmul.f32 1.442695, %v559_v28  ;;  %v544_v0 = vsub.f32 0.0, %v1552_v30 }
 0x127   : > { %v1052_v34 = vpop.eup %1051  ;;  %1077 = vpow2.f32 %v612_v29  ;;  %v1556_v35 = vpop.f32.mrf.mxu0  ;;  %v560_v4 = vsub.f32 0.0, %v1554_v31 }
 0x128   : > { %v1558_v36 = vpop.f32.mrf.mxu1  ;;  %v1054_v37 = vpop.eup %1053  ;;  %v632_v38 = vadd.f32 1.0, %v1052_v34  ;;  %1079 = vpow2.f32 %v582_v32  ;;  %v545_v7 = vsub.f32 0.0, %v1556_v35  ;;  %v584_v14 = vmul.f32 1.442695, %v544_v0 }
 0x129   : > { %v1056_v39 = vpop.eup %1055  ;;  %v648_v40 = vadd.f32 1.0, %v1054_v37  ;;  %1081 = vpow2.f32 %v614_v33  ;;  %v1560_v41 = vpop.f32.mrf.mxu0  ;;  %v561_v10 = vsub.f32 0.0, %v1558_v36  ;;  %v616_v19 = vmul.f32 1.442695, %v560_v4 }
 0x12a   : > { %v1058_v42 = vpop.eup %1057  ;;  %1083 = vrcp.f32 %v632_v38  ;;  %v633_v43 = vadd.f32 1.0, %v1056_v39  ;;  %v1562_v44 = vpop.f32.mrf.mxu1  ;;  %v546_v15 = vsub.f32 0.0, %v1560_v41  ;;  %v586_v22 = vmul.f32 1.442695, %v545_v7 }
 0x12b   : > { %v1060_v45 = vpop.eup %1059  ;;  %1085 = vrcp.f32 %v648_v40  ;;  %v649_v46 = vadd.f32 1.0, %v1058_v42  ;;  %v1564_v51 = vpop.f32.mrf.mxu0  ;;  %v562_v20 = vsub.f32 0.0, %v1562_v44  ;;  %v618_v25 = vmul.f32 1.442695, %v561_v10 }
 0x12c   : > { %v1062_v47 = vpop.eup %1061  ;;  %1087 = vrcp.f32 %v633_v43  ;;  %v634_v48 = vadd.f32 1.0, %v1060_v45  ;;  %v1566_v54 = vpop.f32.mrf.mxu1  ;;  %v547_v23 = vsub.f32 0.0, %v1564_v51  ;;  %v588_v29 = vmul.f32 1.442695, %v546_v15 }
 0x12d   : > { %v1064_v49 = vpop.eup %1063  ;;  %1089 = vrcp.f32 %v649_v46  ;;  %v650_v50 = vadd.f32 1.0, %v1062_v47  ;;  %v1569_v61 = vpop.f32.mrf.mxu0  ;;  %v563_v26 = vsub.f32 0.0, %v1566_v54  ;;  %v620_v33 = vmul.f32 1.442695, %v562_v20 }
 0x12e   : > { %v1066_v52 = vpop.eup %1065  ;;  %1091 = vrcp.f32 %v634_v48  ;;  %v635_v53 = vadd.f32 1.0, %v1064_v49  ;;  %v1574_v1 = vpop.f32.mrf.mxu1  ;;  %v548_v30 = vsub.f32 0.0, %v1569_v61  ;;  %v590_v36 = vmul.f32 1.442695, %v547_v23 }
 0x12f   : > { %v1068_v55 = vpop.eup %1067  ;;  %1093 = vrcp.f32 %v650_v50  ;;  %v651_v56 = vadd.f32 1.0, %v1066_v52  ;;  %v479_v11 = vpop.f32.mrf.mxu0  ;;  %v564_v34 = vsub.f32 0.0, %v1574_v1  ;;  %v622_v39 = vmul.f32 1.442695, %v563_v26 }
 0x130   : > { %v1070_v57 = vpop.eup %1069  ;;  %1095 = vrcp.f32 %v635_v53  ;;  %v636_v58 = vadd.f32 1.0, %v1068_v55  ;;  %v527_v16 = vpop.f32.mrf.mxu1  ;;  %v549_v37 = vsub.f32 0.0, %v479_v11  ;;  %v592_v43 = vmul.f32 1.442695, %v548_v30 }
 0x131   : > { %v1072_v59 = vpop.eup %1071  ;;  %1097 = vrcp.f32 %v651_v56  ;;  %v652_v60 = vadd.f32 1.0, %v1070_v57  ;;  %v483_v27 = vpop.f32.mrf.mxu0  ;;  %v565_v40 = vsub.f32 0.0, %v527_v16  ;;  %v624_v47 = vmul.f32 1.442695, %v564_v34 }
 0x132   : > { %v1074_v62 = vpop.eup %1073  ;;  %1099 = vrcp.f32 %v636_v58  ;;  %v637_v63 = vadd.f32 1.0, %v1072_v59  ;;  %v531_v31 = vpop.f32.mrf.mxu1  ;;  %v550_v44 = vsub.f32 0.0, %v483_v27  ;;  %v594_v50 = vmul.f32 1.442695, %v549_v37 }
 0x133   : > { %v1076_v2 = vpop.eup %1075  ;;  %1101 = vrcp.f32 %v652_v60  ;;  %v653_v3 = vadd.f32 1.0, %v1074_v62  ;;  %v485_v41 = vpop.f32.mrf.mxu0  ;;  %v566_v48 = vsub.f32 0.0, %v531_v31  ;;  %v626_v53 = vmul.f32 1.442695, %v565_v40 }
 0x134   : > { %v1078_v5 = vpop.eup %1077  ;;  %1103 = vrcp.f32 %v637_v63  ;;  %v638_v6 = vadd.f32 1.0, %v1076_v2  ;;  %v533_v45 = vpop.f32.mrf.mxu1  ;;  %v551_v51 = vsub.f32 0.0, %v485_v41  ;;  %v596_v56 = vmul.f32 1.442695, %v550_v44 }
 0x135   : > { %v1080_v8 = vpop.eup %1079  ;;  %1105 = vrcp.f32 %v653_v3  ;;  %v654_v9 = vadd.f32 1.0, %v1078_v5  ;;  %v567_v54 = vsub.f32 0.0, %v533_v45  ;;  %v628_v58 = vmul.f32 1.442695, %v566_v48 }
 0x136   : > { %v1082_v12 = vpop.eup %1081  ;;  %1107 = vrcp.f32 %v638_v6  ;;  %v639_v13 = vadd.f32 1.0, %v1080_v8  ;;  %v598_v60 = vmul.f32 1.442695, %v551_v51 }
 0x137   : > { %v1084_v17 = vpop.eup %1083  ;;  %1109 = vrcp.f32 %v654_v9  ;;  %v655_v18 = vadd.f32 1.0, %v1082_v12  ;;  %v630_v62 = vmul.f32 1.442695, %v567_v54 }
 0x138   : > { %v1086_v21 = vpop.eup %1085  ;;  %696 = vst [vmem:[%s1581_s24] sm:$0xff] %v1084_v17  ;;  %1111 = vrcp.f32 %v639_v13 }
 0x139   : > { %v1088_v24 = vpop.eup %1087  ;;  %712 = vst [vmem:[%s1581_s24 + $0x80] sm:$0xff] %v1086_v21  ;;  %1113 = vrcp.f32 %v655_v18 }
 0x13a   : > { %v1090_v28 = vpop.eup %1089  ;;  %697 = vst [vmem:[%s1581_s24 + $0x8] sm:$0xff] %v1088_v24  ;;  %1115 = vpow2.f32 %v584_v14 }
 0x13b   : > { %v1092_v32 = vpop.eup %1091  ;;  %713 = vst [vmem:[%s1581_s24 + $0x88] sm:$0xff] %v1090_v28  ;;  %1117 = vpow2.f32 %v616_v19 }
 0x13c   : > { %v1094_v35 = vpop.eup %1093  ;;  %698 = vst [vmem:[%s1581_s24 + $0x10] sm:$0xff] %v1092_v32  ;;  %1119 = vpow2.f32 %v586_v22 }
 0x13d   : > { %v1096_v38 = vpop.eup %1095  ;;  %714 = vst [vmem:[%s1581_s24 + $0x90] sm:$0xff] %v1094_v35  ;;  %1121 = vpow2.f32 %v618_v25 }
 0x13e   : > { %v1098_v42 = vpop.eup %1097  ;;  %699 = vst [vmem:[%s1581_s24 + $0x18] sm:$0xff] %v1096_v38  ;;  %1123 = vpow2.f32 %v588_v29 }
 0x13f   : > { %v1100_v46 = vpop.eup %1099  ;;  %715 = vst [vmem:[%s1581_s24 + $0x98] sm:$0xff] %v1098_v42  ;;  %1125 = vpow2.f32 %v620_v33 }
 0x140   : > { %v1102_v49 = vpop.eup %1101  ;;  %700 = vst [vmem:[%s1581_s24 + $0x20] sm:$0xff] %v1100_v46  ;;  %1127 = vpow2.f32 %v590_v36 }
 0x141   : > { %v1104_v52 = vpop.eup %1103  ;;  %716 = vst [vmem:[%s1581_s24 + $0xa0] sm:$0xff] %v1102_v49  ;;  %1129 = vpow2.f32 %v622_v39 }
 0x142   : > { %v1106_v55 = vpop.eup %1105  ;;  %701 = vst [vmem:[%s1581_s24 + $0x28] sm:$0xff] %v1104_v52  ;;  %1131 = vpow2.f32 %v592_v43 }
 0x143   : > { %v1108_v57 = vpop.eup %1107  ;;  %717 = vst [vmem:[%s1581_s24 + $0xa8] sm:$0xff] %v1106_v55  ;;  %1133 = vpow2.f32 %v624_v47 }
 0x144   : > { %v1110_v59 = vpop.eup %1109  ;;  %702 = vst [vmem:[%s1581_s24 + $0x30] sm:$0xff] %v1108_v57  ;;  %1135 = vpow2.f32 %v594_v50 }
 0x145   : > { %v1112_v61 = vpop.eup %1111  ;;  %718 = vst [vmem:[%s1581_s24 + $0xb0] sm:$0xff] %v1110_v59  ;;  %1137 = vpow2.f32 %v626_v53 }
 0x146   : > { %v1114_v63 = vpop.eup %1113  ;;  %703 = vst [vmem:[%s1581_s24 + $0x38] sm:$0xff] %v1112_v61  ;;  %1139 = vpow2.f32 %v596_v56 }
 0x147   : > { %v1116_v0 = vpop.eup %1115  ;;  %719 = vst [vmem:[%s1581_s24 + $0xb8] sm:$0xff] %v1114_v63  ;;  %1141 = vpow2.f32 %v628_v58 }
 0x148   : > { %v1118_v1 = vpop.eup %1117  ;;  %v640_v2 = vadd.f32 1.0, %v1116_v0  ;;  %1143 = vpow2.f32 %v598_v60 }
 0x149   : > { %v1120_v3 = vpop.eup %1119  ;;  %v656_v4 = vadd.f32 1.0, %v1118_v1  ;;  %1145 = vpow2.f32 %v630_v62 }
 0x14a   : > { %v1122_v5 = vpop.eup %1121  ;;  %1147 = vrcp.f32 %v640_v2  ;;  %v641_v6 = vadd.f32 1.0, %v1120_v3 }
 0x14b   : > { %v1124_v7 = vpop.eup %1123  ;;  %1149 = vrcp.f32 %v656_v4  ;;  %v657_v8 = vadd.f32 1.0, %v1122_v5 }
 0x14c   : > { %v1126_v9 = vpop.eup %1125  ;;  %1151 = vrcp.f32 %v641_v6  ;;  %v642_v10 = vadd.f32 1.0, %v1124_v7 }
 0x14d   : > { %v1128_v11 = vpop.eup %1127  ;;  %1153 = vrcp.f32 %v657_v8  ;;  %v658_v12 = vadd.f32 1.0, %v1126_v9 }
 0x14e   : > { %v1130_v13 = vpop.eup %1129  ;;  %1155 = vrcp.f32 %v642_v10  ;;  %v643_v14 = vadd.f32 1.0, %v1128_v11 }
 0x14f   : > { %v1132_v15 = vpop.eup %1131  ;;  %1157 = vrcp.f32 %v658_v12  ;;  %v659_v16 = vadd.f32 1.0, %v1130_v13 }
 0x150   : > { %v1134_v17 = vpop.eup %1133  ;;  %1159 = vrcp.f32 %v643_v14  ;;  %v644_v18 = vadd.f32 1.0, %v1132_v15 }
 0x151   : > { %v1136_v19 = vpop.eup %1135  ;;  %1161 = vrcp.f32 %v659_v16  ;;  %v660_v20 = vadd.f32 1.0, %v1134_v17 }
 0x152   : > { %v1138_v21 = vpop.eup %1137  ;;  %1163 = vrcp.f32 %v644_v18  ;;  %v645_v22 = vadd.f32 1.0, %v1136_v19 }
 0x153   : > { %v1140_v23 = vpop.eup %1139  ;;  %1165 = vrcp.f32 %v660_v20  ;;  %v661_v24 = vadd.f32 1.0, %v1138_v21 }
 0x154   : > { %v1142_v25 = vpop.eup %1141  ;;  %1167 = vrcp.f32 %v645_v22  ;;  %v646_v26 = vadd.f32 1.0, %v1140_v23 }
 0x155   : > { %v1144_v27 = vpop.eup %1143  ;;  %1169 = vrcp.f32 %v661_v24  ;;  %v662_v28 = vadd.f32 1.0, %v1142_v25 }
 0x156   : > { %v1146_v29 = vpop.eup %1145  ;;  %1171 = vrcp.f32 %v646_v26  ;;  %v647_v30 = vadd.f32 1.0, %v1144_v27 }
 0x157   : > { %v1148_v31 = vpop.eup %1147  ;;  %1173 = vrcp.f32 %v662_v28  ;;  %v663_v32 = vadd.f32 1.0, %v1146_v29 }
 0x158   : > { %v1150_v33 = vpop.eup %1149  ;;  %704 = vst [vmem:[%s1581_s24 + $0x40] sm:$0xff] %v1148_v31  ;;  %1175 = vrcp.f32 %v647_v30 }
 0x159   : > { %v1152_v34 = vpop.eup %1151  ;;  %720 = vst [vmem:[%s1581_s24 + $0xc0] sm:$0xff] %v1150_v33  ;;  %1177 = vrcp.f32 %v663_v32 }
 0x15a   : > { %v1154_v35 = vpop.eup %1153  ;;  %705 = vst [vmem:[%s1581_s24 + $0x48] sm:$0xff] %v1152_v34 }
 0x15b   : > { %v1156_v36 = vpop.eup %1155  ;;  %721 = vst [vmem:[%s1581_s24 + $0xc8] sm:$0xff] %v1154_v35 }
 0x15c   : > { %v1158_v37 = vpop.eup %1157  ;;  %706 = vst [vmem:[%s1581_s24 + $0x50] sm:$0xff] %v1156_v36 }
 0x15d   : > { %v1160_v38 = vpop.eup %1159  ;;  %722 = vst [vmem:[%s1581_s24 + $0xd0] sm:$0xff] %v1158_v37 }
 0x15e   : > { %v1162_v39 = vpop.eup %1161  ;;  %707 = vst [vmem:[%s1581_s24 + $0x58] sm:$0xff] %v1160_v38 }
 0x15f   : > { %v1164_v40 = vpop.eup %1163  ;;  %723 = vst [vmem:[%s1581_s24 + $0xd8] sm:$0xff] %v1162_v39 }
 0x160   : > { %v1166_v41 = vpop.eup %1165  ;;  %708 = vst [vmem:[%s1581_s24 + $0x60] sm:$0xff] %v1164_v40 }
 0x161   : > { %v1168_v42 = vpop.eup %1167  ;;  %724 = vst [vmem:[%s1581_s24 + $0xe0] sm:$0xff] %v1166_v41 }
 0x162   : > { %v1170_v43 = vpop.eup %1169  ;;  %709 = vst [vmem:[%s1581_s24 + $0x68] sm:$0xff] %v1168_v42 }
 0x163   : > { %v1172_v44 = vpop.eup %1171  ;;  %725 = vst [vmem:[%s1581_s24 + $0xe8] sm:$0xff] %v1170_v43 }
 0x164   : > { %v1174_v45 = vpop.eup %1173  ;;  %710 = vst [vmem:[%s1581_s24 + $0x70] sm:$0xff] %v1172_v44 }
 0x165   : > { %v1176_v46 = vpop.eup %1175  ;;  %726 = vst [vmem:[%s1581_s24 + $0xf0] sm:$0xff] %v1174_v45 }
 0x166   : > { %v1178_v47 = vpop.eup %1177  ;;  %711 = vst [vmem:[%s1581_s24 + $0x78] sm:$0xff] %v1176_v46 }
 0x167   : > { %727 = vst [vmem:[%s1581_s24 + $0xf8] sm:$0xff] %v1178_v47 }
 0x168   : > { %1192 = shalt.err (!%p1189_p5)
}
 0x169   : > { %s1193_s6 = scalar_lea.hbm %s1621_s29, 4096  ;;  %s1197_s15 = scalar_lea.hbm %s1677_s2, 8192 }
 0x16a   : > { %p1194_p6 = scmp.ne.s32.totalorder %s1621_s29, %s1193_s6  ;;  %p1198_p10 = scmp.lt.s32.totalorder %s1621_s29, %s1677_s2 }
 0x16b   : > { %p1199_p11 = scmp.lt.s32.totalorder %s1197_s15, %s1193_s6 }
 0x16c   : > { %p1195_p7 = pnand %p1194_p6, %p1315_p4 }
 0x16d   : > { %p1200_p12 = por %p1199_p11, %p1198_p10 }
 0x16e   : > { %p1196_p9 = pneg %p1195_p7 }
 0x170   : > { %p1201_p13 = pnand %p1200_p12, %p1196_p9 }
 0x172   : > { %1204 = shalt.err (!%p1201_p13)
}
 0x173   : > { %s1258_s18 = smov 256   ;;  %s1259_s23 = smov 16  }
 0x174   : > { %994 = dma.vmem_to_hbm [thread:$0]  (%p1315_p4), %s1623_s26, 4096, %s1621_s29, %s1630_s12, %s1258_s18, %s1258_s18, %s1259_s23  }
 0x175 PF: > { %p1000_p0 = scmp.ge.s32.totalorder %s1255_s14, 2  ;;  %s760_s24 = sand.u32 1, %s1235_s9  }
 0x176   : > { %s761_s25 = scalar_lea.sflag [#allocation3], %s760_s24 }
 0x177   : > { %p997_p1 = pnand %p1000_p0, %p1322_p8 }
 0x179   : > { %p998_p2 = pneg %p997_p1 }
 0x17b   : > { %1230 = dma.done.wait (%p998_p2), %s761_s25, 4096  }
 0x17c   : > { %1232 = vsyncadd (%p998_p2), %s761_s25, 4294963200  ;;  %s15_s14 = sadd.s32 1, %s1255_s14   ;;  %s1680_s9 = smov %s1239_s10 }
 0x17d   : > { %p12_p3 = scmp.ge.s32.totalorder %s15_s14, 4   ;;  %s1681_s10 = smov %s1243_s11 }
 0x17e   : > { %s1682_s11 = smov %s1328_s22  ;;  %s1683_s12 = smov %s1251_s13 }
 0x17f   : > { %s1684_s13 = smov %s1686_s17  ;;  %14 = sbr.rel (!%p12_p3) target bundleno = 4 (0x4), region = 66 }
 0x184   :  { %766 = vsyncpa [#allocation3], 1 }
 0x185   :  { %768 = vsyncpa [#allocation3 + $0x1], 1 }

</bundles_post_ra>
